<compile_context>
chip_gen: v5e
topology: v5e:2x2
jax: 0.10.0
libtpu: 0.0.40
codegen_flags: <defaults>
</compile_context>

<pallas_src>
import functools

import jax
import jax.numpy as jnp
from jax.experimental import pallas as pl
from jax.experimental.pallas import tpu as pltpu

HIDDEN = 256


def _dynamics_kernel(state_ref, action_ref,
                     w1s_ref, w1a_ref, b1_ref, w2_ref, b2_ref, w3_ref, b3_ref,
                     out_ref):
    # state_ref:  [BT, S] f32  (used for the layer-1 dot AND the residual)
    # action_ref: [BT, A] f32
    # w*_ref: bf16 weights (resident in VMEM), b*_ref: f32 biases (resident)
    state = state_ref[...]                       # f32, kept for the residual
    s_bf = state.astype(jnp.bfloat16)
    a_bf = action_ref[...].astype(jnp.bfloat16)

    # Layer 1, split-K (exact: cat([s, a]) @ W1 == s @ W1[:S] + a @ W1[S:])
    h1 = (jnp.dot(s_bf, w1s_ref[...], preferred_element_type=jnp.float32)
          + jnp.dot(a_bf, w1a_ref[...], preferred_element_type=jnp.float32)
          + b1_ref[...])
    h1 = jnp.maximum(h1, 0.0)

    # Layer 2 (dominant 256x256 matmul)
    h2 = jnp.dot(h1.astype(jnp.bfloat16), w2_ref[...],
                 preferred_element_type=jnp.float32) + b2_ref[...]
    h2 = jnp.maximum(h2, 0.0)

    # Layer 3 + residual (f32 epilogue)
    delta = jnp.dot(h2.astype(jnp.bfloat16), w3_ref[...],
                    preferred_element_type=jnp.float32) + b3_ref[...]
    out_ref[...] = state + delta


def _round_up(x, m):
    return ((x + m - 1) // m) * m


@functools.partial(jax.jit, static_argnames=("block_batch",))
def dynamics_forward(state, action, params, *, block_batch=2048):
    """state: [B, S] f32, action: [B, A] f32 -> [B, S] f32."""
    B, S = state.shape
    A = action.shape[1]
    w1, b1, w2, b2, w3, b3 = params
    H = w1.shape[1]

    # Split W1 once (tiny resident weights); lets the kernel consume state and
    # action directly without a wrapper-side concatenation pass over HBM.
    w1_s = w1[:S]     # [S, H] bf16
    w1_a = w1[S:]     # [A, H] bf16

    # Adaptive batch tile: minimize padding, amortize per-grid-step overhead,
    # and keep >= 2 tiles for large B so v7x's second TensorCore gets work.
    target_tiles = max(pl.cdiv(B, block_batch), 2 if B >= 1024 else 1)
    bt = _round_up(pl.cdiv(B, target_tiles), 8)
    if bt >= B:
        bt = B          # single full-array block: no ragged edge at all
    grid = pl.cdiv(B, bt)

    stream = lambda i: (i, 0)     # tiled along batch
    resident = lambda i: (0, 0)   # same block every step -> stays in VMEM

    out = pl.pallas_call(
        _dynamics_kernel,
        out_shape=jax.ShapeDtypeStruct((B, S), jnp.float32),
        grid=(grid,),
        in_specs=[
            pl.BlockSpec((bt, S), stream),    # state (dot + residual)
            pl.BlockSpec((bt, A), stream),    # action
            pl.BlockSpec((S, H), resident),   # w1[:S]  (bf16)
            pl.BlockSpec((A, H), resident),   # w1[S:]  (bf16)
            pl.BlockSpec((1, H), resident),   # b1
            pl.BlockSpec((H, H), resident),   # w2 (bf16)
            pl.BlockSpec((1, H), resident),   # b2
            pl.BlockSpec((H, S), resident),   # w3 (bf16)
            pl.BlockSpec((1, S), resident),   # b3
        ],
        out_specs=pl.BlockSpec((bt, S), stream),
        compiler_params=pltpu.CompilerParams(
            dimension_semantics=("parallel",),  # shard batch tiles across TCs
        ),
    )(state, action, w1_s, w1_a, b1, w2, b2, w3, b3)

    return out


def init_params(key, state_dim, ac_dim, hidden=HIDDEN):
    """Deterministic init mimicking nn.Linear's uniform(-1/sqrt(fan_in), ...).

    Weights are stored transposed (y = x @ W + b) and cast to bf16 for the MXU;
    biases stay f32.
    """
    ks = jax.random.split(key, 6)
    in1 = state_dim + ac_dim

    def lin(kw, kb, fan_in, fan_out):
        bound = 1.0 / jnp.sqrt(fan_in)
        w = jax.random.uniform(kw, (fan_in, fan_out), jnp.float32, -bound, bound)
        b = jax.random.uniform(kb, (1, fan_out), jnp.float32, -bound, bound)
        return w.astype(jnp.bfloat16), b

    w1, b1 = lin(ks[0], ks[1], in1, hidden)
    w2, b2 = lin(ks[2], ks[3], hidden, hidden)
    w3, b3 = lin(ks[4], ks[5], hidden, state_dim)
    return (w1, b1, w2, b2, w3, b3)


def _reference(state, action, params):
    """Pure-JAX reference with matching bf16-dot / f32-accumulate numerics."""
    w1, b1, w2, b2, w3, b3 = params
    x = jnp.concatenate([state, action], axis=1).astype(jnp.bfloat16)
    h1 = jnp.maximum(
        jnp.dot(x, w1, preferred_element_type=jnp.float32) + b1, 0.0)
    h2 = jnp.maximum(
        jnp.dot(h1.astype(jnp.bfloat16), w2, preferred_element_type=jnp.float32) + b2, 0.0)
    delta = jnp.dot(h2.astype(jnp.bfloat16), w3,
                    preferred_element_type=jnp.float32) + b3
    return state + delta


if __name__ == "__main__":
    batch, state_dim, ac_dim = 8, 16, 8

    key = jax.random.PRNGKey(0)
    k_state, k_action, k_params = jax.random.split(key, 3)

    state = jax.random.normal(k_state, (batch, state_dim), jnp.float32)
    action = jax.random.normal(k_action, (batch, ac_dim), jnp.float32)

    params = init_params(k_params, state_dim, ac_dim)

    out = dynamics_forward(state, action, params)
    out = jax.block_until_ready(out)

    ref = _reference(state, action, params)
    assert out.shape == (batch, state_dim)
    assert jnp.allclose(out, ref, atol=2e-2, rtol=2e-2), \
        float(jnp.max(jnp.abs(out - ref)))

    print("KERNEL_OK")
</pallas_src>

<mosaic_0001>
module attributes {stable_mosaic.version = 11 : i64} {
  func.func @_dynamics_kernel(%arg0: i32, %arg1: memref<8x16xf32, #tpu.memory_space<vmem>>, %arg2: memref<8x8xf32, #tpu.memory_space<vmem>>, %arg3: memref<16x256xbf16, #tpu.memory_space<vmem>>, %arg4: memref<8x256xbf16, #tpu.memory_space<vmem>>, %arg5: memref<1x256xf32, #tpu.memory_space<vmem>>, %arg6: memref<256x256xbf16, #tpu.memory_space<vmem>>, %arg7: memref<1x256xf32, #tpu.memory_space<vmem>>, %arg8: memref<256x16xbf16, #tpu.memory_space<vmem>>, %arg9: memref<1x16xf32, #tpu.memory_space<vmem>>, %arg10: memref<8x16xf32, #tpu.memory_space<vmem>>) attributes {dimension_semantics = [#tpu.dimension_semantics<parallel>], iteration_bounds = array<i64: 1>, scalar_prefetch = 0 : i64, scratch_operands = 0 : i64, tpu.core_type = #tpu.core_type<tc>, window_params = [{transform_indices = @transform_0, window_bounds = array<i64: 8, 16>}, {transform_indices = @transform_1, window_bounds = array<i64: 8, 8>}, {pipeline_mode = #tpu.pipeline_mode<synchronous>, transform_indices = @transform_2, window_bounds = array<i64: 16, 256>}, {pipeline_mode = #tpu.pipeline_mode<synchronous>, transform_indices = @transform_3, window_bounds = array<i64: 8, 256>}, {pipeline_mode = #tpu.pipeline_mode<synchronous>, transform_indices = @transform_4, window_bounds = array<i64: 1, 256>}, {pipeline_mode = #tpu.pipeline_mode<synchronous>, transform_indices = @transform_5, window_bounds = array<i64: 256, 256>}, {pipeline_mode = #tpu.pipeline_mode<synchronous>, transform_indices = @transform_6, window_bounds = array<i64: 1, 256>}, {pipeline_mode = #tpu.pipeline_mode<synchronous>, transform_indices = @transform_7, window_bounds = array<i64: 256, 16>}, {pipeline_mode = #tpu.pipeline_mode<synchronous>, transform_indices = @transform_8, window_bounds = array<i64: 1, 16>}, {transform_indices = @transform_9, window_bounds = array<i64: 8, 16>}]} {
    %c0 = arith.constant 0 : index
    %c0_0 = arith.constant 0 : index
    %0 = vector.load %arg1[%c0, %c0_0] : memref<8x16xf32, #tpu.memory_space<vmem>>, vector<8x16xf32>
    %1 = arith.truncf %0 : vector<8x16xf32> to vector<8x16xbf16>
    %c0_1 = arith.constant 0 : index
    %c0_2 = arith.constant 0 : index
    %2 = vector.load %arg2[%c0_1, %c0_2] : memref<8x8xf32, #tpu.memory_space<vmem>>, vector<8x8xf32>
    %3 = arith.truncf %2 : vector<8x8xf32> to vector<8x8xbf16>
    %c0_3 = arith.constant 0 : index
    %c0_4 = arith.constant 0 : index
    %4 = vector.load %arg3[%c0_3, %c0_4] : memref<16x256xbf16, #tpu.memory_space<vmem>>, vector<16x256xbf16>
    %cst = arith.constant dense<0.000000e+00> : vector<8x256xf32>
    %5 = tpu.matmul %1, %4, %cst {dimension_numbers = #tpu.dot_dimension_numbers<[1], [0], [0], [1], [0, 0, 1, 1], [], []>} : vector<8x16xbf16>, vector<16x256xbf16>, vector<8x256xf32> -> vector<8x256xf32>
    %c0_5 = arith.constant 0 : index
    %c0_6 = arith.constant 0 : index
    %6 = vector.load %arg4[%c0_5, %c0_6] : memref<8x256xbf16, #tpu.memory_space<vmem>>, vector<8x256xbf16>
    %cst_7 = arith.constant dense<0.000000e+00> : vector<8x256xf32>
    %7 = tpu.matmul %3, %6, %cst_7 {dimension_numbers = #tpu.dot_dimension_numbers<[1], [0], [0], [1], [0, 0, 1, 1], [], []>} : vector<8x8xbf16>, vector<8x256xbf16>, vector<8x256xf32> -> vector<8x256xf32>
    %8 = arith.addf %5, %7 : vector<8x256xf32>
    %c0_8 = arith.constant 0 : index
    %c0_9 = arith.constant 0 : index
    %9 = vector.load %arg5[%c0_8, %c0_9] : memref<1x256xf32, #tpu.memory_space<vmem>>, vector<1x256xf32>
    %10 = vector.broadcast %9 : vector<1x256xf32> to vector<8x256xf32>
    %11 = arith.addf %8, %10 : vector<8x256xf32>
    %cst_10 = arith.constant 0.000000e+00 : f32
    %12 = vector.broadcast %cst_10 : f32 to vector<8x256xf32>
    %13 = arith.maximumf %11, %12 : vector<8x256xf32>
    %14 = arith.truncf %13 : vector<8x256xf32> to vector<8x256xbf16>
    %c0_11 = arith.constant 0 : index
    %c0_12 = arith.constant 0 : index
    %15 = vector.load %arg6[%c0_11, %c0_12] : memref<256x256xbf16, #tpu.memory_space<vmem>>, vector<256x256xbf16>
    %cst_13 = arith.constant dense<0.000000e+00> : vector<8x256xf32>
    %16 = tpu.matmul %14, %15, %cst_13 {dimension_numbers = #tpu.dot_dimension_numbers<[1], [0], [0], [1], [0, 0, 1, 1], [], []>} : vector<8x256xbf16>, vector<256x256xbf16>, vector<8x256xf32> -> vector<8x256xf32>
    %c0_14 = arith.constant 0 : index
    %c0_15 = arith.constant 0 : index
    %17 = vector.load %arg7[%c0_14, %c0_15] : memref<1x256xf32, #tpu.memory_space<vmem>>, vector<1x256xf32>
    %18 = vector.broadcast %17 : vector<1x256xf32> to vector<8x256xf32>
    %19 = arith.addf %16, %18 : vector<8x256xf32>
    %cst_16 = arith.constant 0.000000e+00 : f32
    %20 = vector.broadcast %cst_16 : f32 to vector<8x256xf32>
    %21 = arith.maximumf %19, %20 : vector<8x256xf32>
    %22 = arith.truncf %21 : vector<8x256xf32> to vector<8x256xbf16>
    %c0_17 = arith.constant 0 : index
    %c0_18 = arith.constant 0 : index
    %23 = vector.load %arg8[%c0_17, %c0_18] : memref<256x16xbf16, #tpu.memory_space<vmem>>, vector<256x16xbf16>
    %cst_19 = arith.constant dense<0.000000e+00> : vector<8x16xf32>
    %24 = tpu.matmul %22, %23, %cst_19 {dimension_numbers = #tpu.dot_dimension_numbers<[1], [0], [0], [1], [0, 0, 1, 1], [], []>} : vector<8x256xbf16>, vector<256x16xbf16>, vector<8x16xf32> -> vector<8x16xf32>
    %c0_20 = arith.constant 0 : index
    %c0_21 = arith.constant 0 : index
    %25 = vector.load %arg9[%c0_20, %c0_21] : memref<1x16xf32, #tpu.memory_space<vmem>>, vector<1x16xf32>
    %26 = vector.broadcast %25 : vector<1x16xf32> to vector<8x16xf32>
    %27 = arith.addf %24, %26 : vector<8x16xf32>
    %28 = arith.addf %0, %27 : vector<8x16xf32>
    %c0_22 = arith.constant 0 : index
    %c0_23 = arith.constant 0 : index
    %29 = vector.load %arg10[%c0_22, %c0_23] : memref<8x16xf32, #tpu.memory_space<vmem>>, vector<8x16xf32>
    tpu.vector_store %arg10[%c0_22, %c0_23], %28 {strides = array<i32>} : memref<8x16xf32, #tpu.memory_space<vmem>>, vector<8x16xf32>,
    return
  }
  func.func @transform_0(%arg0: i32) -> (i32, i32) {
    %c0_i32 = arith.constant 0 : i32
    %c0_i32_0 = arith.constant 0 : i32
    return %arg0, %c0_i32 : i32, i32
  }
  func.func @transform_1(%arg0: i32) -> (i32, i32) {
    %c0_i32 = arith.constant 0 : i32
    %c0_i32_0 = arith.constant 0 : i32
    return %arg0, %c0_i32 : i32, i32
  }
  func.func @transform_2(%arg0: i32) -> (i32, i32) {
    %c0_i32 = arith.constant 0 : i32
    %c0_i32_0 = arith.constant 0 : i32
    %c0_i32_1 = arith.constant 0 : i32
    return %c0_i32, %c0_i32_0 : i32, i32
  }
  func.func @transform_3(%arg0: i32) -> (i32, i32) {
    %c0_i32 = arith.constant 0 : i32
    %c0_i32_0 = arith.constant 0 : i32
    %c0_i32_1 = arith.constant 0 : i32
    return %c0_i32, %c0_i32_0 : i32, i32
  }
  func.func @transform_4(%arg0: i32) -> (i32, i32) {
    %c0_i32 = arith.constant 0 : i32
    %c0_i32_0 = arith.constant 0 : i32
    %c0_i32_1 = arith.constant 0 : i32
    return %c0_i32, %c0_i32_0 : i32, i32
  }
  func.func @transform_5(%arg0: i32) -> (i32, i32) {
    %c0_i32 = arith.constant 0 : i32
    %c0_i32_0 = arith.constant 0 : i32
    %c0_i32_1 = arith.constant 0 : i32
    return %c0_i32, %c0_i32_0 : i32, i32
  }
  func.func @transform_6(%arg0: i32) -> (i32, i32) {
    %c0_i32 = arith.constant 0 : i32
    %c0_i32_0 = arith.constant 0 : i32
    %c0_i32_1 = arith.constant 0 : i32
    return %c0_i32, %c0_i32_0 : i32, i32
  }
  func.func @transform_7(%arg0: i32) -> (i32, i32) {
    %c0_i32 = arith.constant 0 : i32
    %c0_i32_0 = arith.constant 0 : i32
    %c0_i32_1 = arith.constant 0 : i32
    return %c0_i32, %c0_i32_0 : i32, i32
  }
  func.func @transform_8(%arg0: i32) -> (i32, i32) {
    %c0_i32 = arith.constant 0 : i32
    %c0_i32_0 = arith.constant 0 : i32
    %c0_i32_1 = arith.constant 0 : i32
    return %c0_i32, %c0_i32_0 : i32, i32
  }
  func.func @transform_9(%arg0: i32) -> (i32, i32) {
    %c0_i32 = arith.constant 0 : i32
    %c0_i32_0 = arith.constant 0 : i32
    return %arg0, %c0_i32 : i32, i32
  }
}

</mosaic_0001>

<bundles_post_ra>
// kernel: dynamics_forward.1
= control target key start
LH: loop header
LB: loop body
LE: loop exit
PB: predicated region body
PF: predicated region fallthrough
CT: control target
= control target key end

     0   :  { %14 = vsyncpa [#allocation3], 0  ;;  %s1043_s0 = inlined_call_operand.vmem [shape: f32[8,16], index: 0, kind: input, shape index: {}]   ;;  %s1044_s1 = inlined_call_operand.vmem [shape: f32[8,8], index: 1, kind: input, shape index: {}]   ;;  %s1045_s2 = inlined_call_operand.vmem [shape: bf16[16,256], index: 2, kind: input, shape index: {}]   ;;  %s1046_s3 = inlined_call_operand.vmem [shape: bf16[8,256], index: 3, kind: input, shape index: {}]   ;;  %s1047_s4 = inlined_call_operand.vmem [shape: f32[1,256], index: 4, kind: input, shape index: {}]   ;;  %s1048_s5 = inlined_call_operand.hbm [shape: bf16[256,256], index: 5, kind: input, shape index: {}]   ;;  %s1049_s6 = inlined_call_operand.vmem [shape: f32[1,256], index: 6, kind: input, shape index: {}]   ;;  %s1050_s7 = inlined_call_operand.vmem [shape: bf16[256,16], index: 7, kind: input, shape index: {}]   ;;  %s1051_s8 = inlined_call_operand.vmem [shape: f32[1,16], index: 8, kind: input, shape index: {}]   ;;  %s1052_s9 = inlined_call_operand.hbm [shape: f32[8,16], index: 9, kind: output, shape index: {}]  }
   0x1   :  { %15 = vsyncpa [#allocation4], 0  ;;  %s30_s11 = sshll.u32 %s1048_s5, 4  ;;  %s893_s12 = smov [#allocation2]   ;;  %s31_s11 = int_to_ptr.hbm [resolvable:$true] %s30_s11 }
   0x2   :  { %s32_s13 = sshll.u32 %s893_s12, 4  ;;  %s894_s14 = smov 128   ;;  %s33_s13 = int_to_ptr.vmem [resolvable:$true] %s32_s13 }
   0x3   :  { %s895_s15 = smov 8  }
   0x4   :  { %38 = dma.hbm_to_vmem [thread:$0]  %s31_s11, 4096, %s33_s13, [#allocation3], %s894_s14, %s894_s14, %s895_s15  }
   0x5   :  { %889 = dma.done.wait [#allocation3], 4096  }
   0x6   :  { %890 = vsyncadd [#allocation3], 4294963200  ;;  %v56_v0 = vld [vmem:[%s1046_s3] sm:$0xff]  ;;  %vm66_vm0 = vcmask 1043456   ;;  %v787_v4 = vld [vmem:[%s1045_s2 + $0x4] sm:$0xf0] }
   0x7   :  { %v586_v1 = vld [vmem:[%s1045_s2] sm:$0xf]  ;;  %v58_v2 = vunpack.c.l.b16 %v56_v0  ;;  %v59_v3 = vunpack.c.h.b16 %v56_v0  ;;  %v786_v5 = vld [vmem:[%s1045_s2 + $0x4] sm:$0xf]  ;;  %v588_v6 = vld [vmem:[%s1045_s2 + $0x8] sm:$0xf0] }
   0x8   :  { %v52_v7 = vld [vmem:[%s1044_s1] sm:$0xff]  ;;  %vm62_vm1 = vcmask 64512   ;;  %v587_v8 = vor.u32 %v787_v4, %v586_v1  ;;  %v652_v9 = vld [vmem:[#allocation2 + $0x70] sm:$0xf]  ;;  %v803_v10 = vld [vmem:[#allocation2 + $0x74] sm:$0xf0]  ;;  %v591_v13 = vor.u32 %v786_v5, %v588_v6 }
   0x9   :  { %v60_v11 = vpack.c.b16 %v58_v2, %v58_v2  ;;  %v61_v12 = vpack.c.b16 %v59_v3, %v59_v3  ;;  %v653_v14 = vor.u32 %v803_v10, %v652_v9  ;;  %v716_v15 = vld [vmem:[#allocation2 + $0xf0] sm:$0xf]  ;;  %v819_v16 = vld [vmem:[#allocation2 + $0xf4] sm:$0xf0]  ;;  %v802_v17 = vld [vmem:[#allocation2 + $0x74] sm:$0xf]  ;;  %v53_v24 = vpack.c.bf16 %v52_v7, %v52_v7 }
   0xa   :  { %v717_v18 = vor.u32 %v819_v16, %v716_v15  ;;  %v654_v19 = vld [vmem:[#allocation2 + $0x78] sm:$0xf0]  ;;  %v818_v20 = vld [vmem:[#allocation2 + $0xf4] sm:$0xf]  ;;  %v644_v25 = vld [vmem:[#allocation2 + $0x60] sm:$0xf] }
   0xb   :  { %v718_v21 = vld [vmem:[#allocation2 + $0xf8] sm:$0xf0]  ;;  %v68_v22 = vsel %vm66_vm0, %v60_v11, 0  ;;  %v71_v23 = vsel %vm66_vm0, %v61_v12, 0  ;;  %349 = vmatpush.bf16.msra.mxu0 %v653_v14  ;;  %v801_v26 = vld [vmem:[#allocation2 + $0x64] sm:$0xf0]  ;;  %v657_v27 = vor.u32 %v802_v17, %v654_v19 }
   0xc   :  { %80 = vmatpush.bf16.msra.mxu2 %v68_v22  ;;  %93 = vmatpush.bf16.msra.mxu3 %v71_v23  ;;  %v721_v28 = vor.u32 %v818_v20, %v718_v21  ;;  %v708_v29 = vld [vmem:[#allocation2 + $0xe0] sm:$0xf]  ;;  %v817_v30 = vld [vmem:[#allocation2 + $0xe4] sm:$0xf0]  ;;  %v800_v31 = vld [vmem:[#allocation2 + $0x64] sm:$0xf]  ;;  %v645_v32 = vor.u32 %v801_v26, %v644_v25 }
   0xd   :  { %v646_v33 = vld [vmem:[#allocation2 + $0x68] sm:$0xf0]  ;;  %v816_v34 = vld [vmem:[#allocation2 + $0xe4] sm:$0xf]  ;;  %362 = vmatpush.bf16.msra.mxu1 %v717_v18  ;;  %v709_v36 = vor.u32 %v817_v30, %v708_v29  ;;  %vm109_vm2 = vcmask 130048   ;;  %s896_s13 = smov [#allocation5]  }
   0xe   :  { %v710_v35 = vld [vmem:[#allocation2 + $0xe8] sm:$0xf0]  ;;  %v649_v37 = vor.u32 %v800_v31, %v646_v33  ;;  %v975_v39 = vld [vmem:[%s1043_s0] sm:$0xff]  ;;  %v636_v41 = vld [vmem:[#allocation2 + $0x50] sm:$0xf]  ;;  %s570_s14 = sshll.u32 %s896_s13, 4  ;;  %s571_s14 = int_to_ptr.vmem [resolvable:$true] %s570_s14 }
   0xf   :  { %582 = vmatmul.msk.bf16.vlgmr.msra.gmra.mxu2 %vm62_vm1, %v53_v24  ;;  %583 = vmatmul.msk.bf16.vlgmr.msra.gmra.mxu3 %vm62_vm1, %v53_v24  ;;  %v713_v38 = vor.u32 %v816_v34, %v710_v35  ;;  %v51_v40 = vpack.c.bf16 %v975_v39, %v975_v39  ;;  %v799_v42 = vld [vmem:[#allocation2 + $0x54] sm:$0xf0]  ;;  %v700_v43 = vld [vmem:[#allocation2 + $0xd0] sm:$0xf]  ;;  %v798_v46 = vld [vmem:[#allocation2 + $0x54] sm:$0xf] }
  0x10   :  { %120 = vmatpush.bf16.msrb.mxu2 %v587_v8  ;;  %133 = vmatpush.bf16.msrb.mxu3 %v591_v13  ;;  %v637_v44 = vor.u32 %v799_v42, %v636_v41  ;;  %v815_v45 = vld [vmem:[#allocation2 + $0xd4] sm:$0xf0]  ;;  %v638_v47 = vld [vmem:[#allocation2 + $0x58] sm:$0xf0]  ;;  %v814_v50 = vld [vmem:[#allocation2 + $0xd4] sm:$0xf] }
  0x11   :  { %350 = vmatpush.bf16.msra.mxu0 %v645_v32  ;;  %363 = vmatpush.bf16.msra.mxu1 %v709_v36  ;;  %v701_v48 = vor.u32 %v815_v45, %v700_v43  ;;  %v641_v49 = vor.u32 %v798_v46, %v638_v47  ;;  %v702_v51 = vld [vmem:[#allocation2 + $0xd8] sm:$0xf0]  ;;  %v628_v52 = vld [vmem:[#allocation2 + $0x40] sm:$0xf]  ;;  %v797_v54 = vld [vmem:[#allocation2 + $0x44] sm:$0xf0] }
  0x12   :  { %v705_v53 = vor.u32 %v814_v50, %v702_v51  ;;  %v692_v55 = vld [vmem:[#allocation2 + $0xc0] sm:$0xf]  ;;  %v813_v56 = vld [vmem:[#allocation2 + $0xc4] sm:$0xf0]  ;;  %v629_v57 = vor.u32 %v797_v54, %v628_v52  ;;  %v796_v59 = vld [vmem:[#allocation2 + $0x44] sm:$0xf] }
  0x13   :  { %v693_v58 = vor.u32 %v813_v56, %v692_v55  ;;  %v630_v60 = vld [vmem:[#allocation2 + $0x48] sm:$0xf0]  ;;  %v812_v61 = vld [vmem:[#allocation2 + $0xc4] sm:$0xf]  ;;  %v620_v1 = vld [vmem:[#allocation2 + $0x30] sm:$0xf] }
  0x14   :  { %375 = vmatpush.bf16.msra.mxu2 %v657_v27  ;;  %388 = vmatpush.bf16.msra.mxu3 %v721_v28  ;;  %v633_v62 = vor.u32 %v796_v59, %v630_v60  ;;  %v694_v63 = vld [vmem:[#allocation2 + $0xc8] sm:$0xf0]  ;;  %v795_v2 = vld [vmem:[#allocation2 + $0x34] sm:$0xf0]  ;;  %v684_v3 = vld [vmem:[#allocation2 + $0xb0] sm:$0xf] }
  0x15   :  { %351 = vmatpush.bf16.msra.mxu0 %v637_v44  ;;  %364 = vmatpush.bf16.msra.mxu1 %v701_v48  ;;  %v697_v0 = vor.u32 %v812_v61, %v694_v63  ;;  %v621_v4 = vor.u32 %v795_v2, %v620_v1  ;;  %v811_v5 = vld [vmem:[#allocation2 + $0xb4] sm:$0xf0]  ;;  %v794_v6 = vld [vmem:[#allocation2 + $0x34] sm:$0xf]  ;;  %v622_v7 = vld [vmem:[#allocation2 + $0x38] sm:$0xf0] }
  0x16   :  { %v685_v8 = vor.u32 %v811_v5, %v684_v3  ;;  %v625_v9 = vor.u32 %v794_v6, %v622_v7  ;;  %v810_v10 = vld [vmem:[#allocation2 + $0xb4] sm:$0xf]  ;;  %v686_v11 = vld [vmem:[#allocation2 + $0xb8] sm:$0xf0]  ;;  %v612_v12 = vld [vmem:[#allocation2 + $0x20] sm:$0xf] }
  0x17   :  { %v689_v13 = vor.u32 %v810_v10, %v686_v11  ;;  %v793_v14 = vld [vmem:[#allocation2 + $0x24] sm:$0xf0]  ;;  %v676_v15 = vld [vmem:[#allocation2 + $0xa0] sm:$0xf]  ;;  %v792_v19 = vld [vmem:[#allocation2 + $0x24] sm:$0xf] }
  0x18   :  { %376 = vmatpush.bf16.msra.mxu2 %v649_v37  ;;  %389 = vmatpush.bf16.msra.mxu3 %v713_v38  ;;  %v809_v16 = vld [vmem:[#allocation2 + $0xa4] sm:$0xf0]  ;;  %v613_v17 = vor.u32 %v793_v14, %v612_v12  ;;  %v614_v20 = vld [vmem:[#allocation2 + $0x28] sm:$0xf0]  ;;  %v808_v21 = vld [vmem:[#allocation2 + $0xa4] sm:$0xf] }
  0x19   :  { %352 = vmatpush.bf16.msra.mxu0 %v629_v57  ;;  %365 = vmatpush.bf16.msra.mxu1 %v693_v58  ;;  %v677_v18 = vor.u32 %v809_v16, %v676_v15  ;;  %v617_v22 = vor.u32 %v792_v19, %v614_v20  ;;  %v678_v23 = vld [vmem:[#allocation2 + $0xa8] sm:$0xf0]  ;;  %v604_v25 = vld [vmem:[#allocation2 + $0x10] sm:$0xf]  ;;  %v791_v26 = vld [vmem:[#allocation2 + $0x14] sm:$0xf0] }
  0x1a   :  { %v681_v24 = vor.u32 %v808_v21, %v678_v23  ;;  %v668_v27 = vld [vmem:[#allocation2 + $0x90] sm:$0xf]  ;;  %v605_v28 = vor.u32 %v791_v26, %v604_v25  ;;  %v807_v29 = vld [vmem:[#allocation2 + $0x94] sm:$0xf0]  ;;  %v790_v30 = vld [vmem:[#allocation2 + $0x14] sm:$0xf] }
  0x1b   :  { %v606_v31 = vld [vmem:[#allocation2 + $0x18] sm:$0xf0]  ;;  %v669_v32 = vor.u32 %v807_v29, %v668_v27  ;;  %v806_v34 = vld [vmem:[#allocation2 + $0x94] sm:$0xf]  ;;  %v596_v36 = vld [vmem:[#allocation2] sm:$0xf] }
  0x1c   :  { %377 = vmatpush.bf16.msra.mxu2 %v641_v49  ;;  %390 = vmatpush.bf16.msra.mxu3 %v705_v53  ;;  %v609_v33 = vor.u32 %v790_v30, %v606_v31  ;;  %v670_v35 = vld [vmem:[#allocation2 + $0x98] sm:$0xf0]  ;;  %v789_v38 = vld [vmem:[#allocation2 + $0x4] sm:$0xf0]  ;;  %v788_v44 = vld [vmem:[#allocation2 + $0x4] sm:$0xf] }
  0x1d   :  { %353 = vmatpush.bf16.msra.mxu0 %v621_v4  ;;  %366 = vmatpush.bf16.msra.mxu1 %v685_v8  ;;  %v673_v37 = vor.u32 %v806_v34, %v670_v35  ;;  %v805_v41 = vld [vmem:[#allocation2 + $0x84] sm:$0xf0]  ;;  %v597_v42 = vor.u32 %v789_v38, %v596_v36  ;;  %v598_v45 = vld [vmem:[#allocation2 + $0x8] sm:$0xf0]  ;;  %v804_v46 = vld [vmem:[#allocation2 + $0x84] sm:$0xf] }
  0x1e   :  { %v601_v47 = vor.u32 %v788_v44, %v598_v45  ;;  %v662_v48 = vld [vmem:[#allocation2 + $0x88] sm:$0xf0]  ;;  %v827_v50 = vld [vmem:[%s1050_s7 + $0x38] sm:$0xff]  ;;  %v826_v52 = vld [vmem:[%s1050_s7 + $0x30] sm:$0xff]  ;;  %s572_s17 = sshll.u32 %s1052_s9, 4  ;;  %s573_s17 = int_to_ptr.hbm [resolvable:$true] %s572_s17 }
  0x1f   :  { %592 = vmatmul.msk.bf16.vlgmr.msrb.gmra.mxu2 %vm109_vm2, %v51_v40  ;;  %593 = vmatmul.msk.bf16.vlgmr.msrb.gmra.mxu3 %vm109_vm2, %v51_v40  ;;  %v660_v40 = vld [vmem:[#allocation2 + $0x80] sm:$0xf]  ;;  %v665_v49 = vor.u32 %v804_v46, %v662_v48  ;;  %v835_v51 = vld [vmem:[%s1050_s7 + $0x78] sm:$0xff]  ;;  %v834_v53 = vld [vmem:[%s1050_s7 + $0x70] sm:$0xff] }
  0x20   :  { %378 = vmatpush.bf16.msra.mxu2 %v633_v62  ;;  %391 = vmatpush.bf16.msra.mxu3 %v697_v0  ;;  %v661_v43 = vor.u32 %v805_v41, %v660_v40  ;;  %v825_v56 = vld [vmem:[%s1050_s7 + $0x28] sm:$0xff]  ;;  %v824_v58 = vld [vmem:[%s1050_s7 + $0x20] sm:$0xff]  ;;  %v823_v62 = vld [vmem:[%s1050_s7 + $0x18] sm:$0xff] }
  0x21   :  { %354 = vmatpush.bf16.msra.mxu0 %v613_v17  ;;  %367 = vmatpush.bf16.msra.mxu1 %v677_v18  ;;  %v833_v57 = vld [vmem:[%s1050_s7 + $0x68] sm:$0xff]  ;;  %v832_v59 = vld [vmem:[%s1050_s7 + $0x60] sm:$0xff]  ;;  %v822_v0 = vld [vmem:[%s1050_s7 + $0x10] sm:$0xff] }
  0x22   :  { %v139_v63 = vld [vmem:[%s1047_s4] sm:$0x3]  ;;  %v831_v15 = vld [vmem:[%s1050_s7 + $0x58] sm:$0xff]  ;;  %v821_v16 = vld [vmem:[%s1050_s7 + $0x8] sm:$0xff] }
  0x23   :  { %v141_v1 = vperm.slane %v139_v63, 0  ;;  %v142_v2 = vperm.slane %v139_v63, 1  ;;  %v830_v17 = vld [vmem:[%s1050_s7 + $0x50] sm:$0xff]  ;;  %v820_v18 = vld [vmem:[%s1050_s7] sm:$0xff]  ;;  %v829_v19 = vld [vmem:[%s1050_s7 + $0x48] sm:$0xff] }
  0x24   :  { %379 = vmatpush.bf16.msra.mxu2 %v625_v9  ;;  %392 = vmatpush.bf16.msra.mxu3 %v689_v13  ;;  %v828_v20 = vld [vmem:[%s1050_s7 + $0x40] sm:$0xff] }
  0x25   :  { %355 = vmatpush.bf16.msra.mxu0 %v605_v28  ;;  %368 = vmatpush.bf16.msra.mxu1 %v669_v32  ;;  %v183_v21 = vld [vmem:[%s1049_s6] sm:$0x3] }
  0x26   :  { %v186_v27 = vperm.slane %v183_v21, 1 }
  0x28   :  { %380 = vmatpush.bf16.msra.mxu2 %v617_v22  ;;  %393 = vmatpush.bf16.msra.mxu3 %v681_v24  ;;  %v185_v22 = vperm.slane %v183_v21, 0 }
  0x29   :  { %356 = vmatpush.bf16.msra.mxu0 %v597_v42  ;;  %369 = vmatpush.bf16.msra.mxu1 %v661_v43  ;;  %v840_v42 = vld [vmem:[%s1051_s8] ss:$0 sm:$0xff] }
  0x2c   :  { %381 = vmatpush.bf16.msra.mxu2 %v609_v33  ;;  %394 = vmatpush.bf16.msra.mxu3 %v673_v37 }
  0x2d   :  { %537 = vmatpush.bf16.msrb.mxu0 %v827_v50  ;;  %550 = vmatpush.bf16.msrb.mxu1 %v835_v51 }
  0x30   :  { %382 = vmatpush.bf16.msra.mxu2 %v601_v47  ;;  %395 = vmatpush.bf16.msra.mxu3 %v665_v49 }
  0x31   :  { %538 = vmatpush.bf16.msrb.mxu0 %v826_v52  ;;  %551 = vmatpush.bf16.msrb.mxu1 %v834_v53 }
  0x35   :  { %539 = vmatpush.bf16.msrb.mxu0 %v825_v56  ;;  %552 = vmatpush.bf16.msrb.mxu1 %v833_v57 }
  0x39   :  { %540 = vmatpush.bf16.msrb.mxu0 %v824_v58  ;;  %553 = vmatpush.bf16.msrb.mxu1 %v832_v59 }
  0x3d   :  { %541 = vmatpush.bf16.msrb.mxu0 %v823_v62  ;;  %554 = vmatpush.bf16.msrb.mxu1 %v831_v15 }
  0x41   :  { %542 = vmatpush.bf16.msrb.mxu0 %v822_v0  ;;  %555 = vmatpush.bf16.msrb.mxu1 %v830_v17 }
  0x45   :  { %543 = vmatpush.bf16.msrb.mxu0 %v821_v16  ;;  %556 = vmatpush.bf16.msrb.mxu1 %v829_v19 }
  0x49   :  { %544 = vmatpush.bf16.msrb.mxu0 %v820_v18  ;;  %557 = vmatpush.bf16.msrb.mxu1 %v828_v20 }
  0x92   :  { %v82_v54 = vpop.f32.mrf.mxu2  ;;  %v95_v55 = vpop.f32.mrf.mxu3 }
  0x9a   :  { %v84_v60 = vpop.f32.mrf.mxu2  ;;  %v97_v61 = vpop.f32.mrf.mxu3 }
  0xa2   :  { %v122_v3 = vpop.f32.mrf.mxu2  ;;  %v135_v4 = vpop.f32.mrf.mxu3 }
  0xa3   :  { %v123_v5 = vadd.f32 %v122_v3, %v82_v54  ;;  %v136_v6 = vadd.f32 %v135_v4, %v95_v55 }
  0xa5   :  { %v145_v7 = vadd.f32 %v141_v1, %v123_v5  ;;  %v146_v8 = vadd.f32 %v142_v2, %v136_v6 }
  0xa7   :  { %v147_v9 = vmax.f32 %v145_v7, 0.0  ;;  %v148_v10 = vmax.f32 %v146_v8, 0.0 }
  0xa9   :  { %v149_v11 = vpack.c.bf16 %v147_v9, %v147_v9  ;;  %v150_v12 = vpack.c.bf16 %v148_v10, %v148_v10 }
  0xaa   :  { %v124_v13 = vpop.f32.mrf.mxu2  ;;  %v137_v14 = vpop.f32.mrf.mxu3 }
  0xab   :  { %357 = vmatmul.bf16.vlgmr.msra.gmra.mxu0 %v149_v11  ;;  %370 = vmatmul.bf16.vlgmr.msra.gmra.mxu1 %v150_v12 }
  0xac   :  { %383 = vmatmul.bf16.vlgmr.msra.gmra.mxu2 %v149_v11  ;;  %396 = vmatmul.bf16.vlgmr.msra.gmra.mxu3 %v150_v12 }
 0x128   :  { %v358_v23 = vpop.f32.mrf.mxu0  ;;  %v371_v24 = vpop.f32.mrf.mxu1 }
 0x129   :  { %v359_v25 = vadd.f32 %v358_v23, %v185_v22 }
 0x12b   :  { %v372_v26 = vadd.f32 %v371_v24, %v359_v25 }
 0x12d   :  { %v401_v28 = vmax.f32 %v372_v26, 0.0 }
 0x12f   :  { %v403_v29 = vpack.c.bf16 %v401_v28, %v401_v28  ;;  %v384_v30 = vpop.f32.mrf.mxu2  ;;  %v397_v31 = vpop.f32.mrf.mxu3 }
 0x130   :  { %v385_v32 = vadd.f32 %v384_v30, %v186_v27  ;;  %v360_v33 = vpop.f32.mrf.mxu0  ;;  %v373_v34 = vpop.f32.mrf.mxu1 }
 0x131   :  { %545 = vmatmul.bf16.vlgmr.msrb.gmra.mxu0 %v403_v29 }
 0x132   :  { %v398_v35 = vadd.f32 %v397_v31, %v385_v32 }
 0x134   :  { %v402_v36 = vmax.f32 %v398_v35, 0.0 }
 0x136   :  { %v404_v37 = vpack.c.bf16 %v402_v36, %v402_v36 }
 0x137   :  { %v386_v38 = vpop.f32.mrf.mxu2  ;;  %v399_v40 = vpop.f32.mrf.mxu3 }
 0x138   :  { %558 = vmatmul.bf16.vlgmr.msrb.gmra.mxu1 %v404_v37 }
 0x1ae   :  { %v546_v41 = vpop.f32.mrf.mxu0 }
 0x1af   :  { %v547_v43 = vadd.f32 %v840_v42, %v546_v41 }
 0x1b5   :  { %v559_v44 = vpop.f32.mrf.mxu1 }
 0x1b6   :  { %v560_v45 = vadd.f32 %v559_v44, %v547_v43  ;;  %v548_v46 = vpop.f32.mrf.mxu0 }
 0x1b8   :  { %v563_v47 = vadd.f32 %v560_v45, %v975_v39 }
 0x1ba   :  { %564 = vst.msk [vmem:[#allocation5] sm:$0xff] %vm109_vm2, %v563_v47 }
 0x1bb   :  { %575 = dma.vmem_to_hbm [thread:$0]  %s571_s14, 128, %s573_s17, [#allocation4]  }
 0x1bd   :  { %v561_v48 = vpop.f32.mrf.mxu1 }
 0x1be   :  { %891 = dma.done.wait [#allocation4], 128  }
 0x1bf   :  { %892 = vsyncadd [#allocation4], 4294967168 }
 0x1c0   :  { %580 = vsyncpa [#allocation3], 1 }
 0x1c1   :  { %581 = vsyncpa [#allocation4], 1 }

</bundles_post_ra>
